<compile_context>
chip_gen: v6e
topology: v6e:2x2x1
jax: 0.10.0
libtpu: 0.0.40
codegen_flags: <defaults>
</compile_context>

<pallas_src>
import functools

import jax
import jax.numpy as jnp
from jax.experimental import pallas as pl
from jax.experimental.pallas import tpu as pltpu

IGNORE_INDEX = 19


def _wnll_kernel(logits_ref, labels_ref, w_ref, num_ref, den_ref,
                 acc_num, acc_den, *, hw, tile, need_mask):
    """Weighted NLL over one (split, batch, pixel-tile) grid point.

    logits_ref : [C, T] raw logits (any float dtype; upcast to f32 here)
    labels_ref : [1, T] i32
    w_ref      : [C, 1] f32 per-class weights
    num_ref    : [1, 1] f32 per-(split,batch) sum(-w[y] * logp[y])  (written on last tile)
    den_ref    : [1, 1] f32 per-(split,batch) sum( w[y] )           (written on last tile)
    acc_num/acc_den : [1, T] f32 lane-wide partial accumulators
    """
    j = pl.program_id(2)

    @pl.when(j == 0)
    def _():
        acc_num[...] = jnp.zeros_like(acc_num)
        acc_den[...] = jnp.zeros_like(acc_den)

    x = logits_ref[...].astype(jnp.float32)                # [C, T]
    lbl = labels_ref[...]                                   # [1, T]

    # logsumexp over the class (sublane) axis; z = x - m fuses into exp() and dies.
    m = jnp.max(x, axis=0, keepdims=True)                   # [1, T]
    sumexp = jnp.sum(jnp.exp(x - m), axis=0, keepdims=True)  # [1, T]
    full_lse = m + jnp.log(sumexp)                           # [1, T] = logsumexp(x)

    # Gather x[y] and w[y] with a bool one-hot (exactly one match per valid lane).
    class_ids = jax.lax.broadcasted_iota(jnp.int32, x.shape, 0)   # [C, T]
    onehot = class_ids == lbl                                      # [C, T] bool
    sel_w = jnp.sum(jnp.where(onehot, w_ref[...], 0.0),
                    axis=0, keepdims=True)                         # [1, T]
    sel_x = jnp.sum(jnp.where(onehot, x, 0.0),
                    axis=0, keepdims=True)                         # [1, T]

    valid = lbl != IGNORE_INDEX                                    # [1, T]
    if need_mask:
        # Last pixel tile overhangs H*W: exclude out-of-bounds lanes with a
        # SELECT (their logits/labels are unspecified; exp() of garbage can be
        # inf/NaN, so never exclude by multiplication).
        g = pl.program_id(0) * pl.num_programs(2) + j              # global tile idx
        pix = g * tile + jax.lax.broadcasted_iota(jnp.int32, (1, tile), 1)
        valid = jnp.logical_and(valid, pix < hw)

    # -w[y] * logp[y] = w[y] * (logsumexp(x) - x[y])
    acc_num[...] += jnp.where(valid, sel_w * (full_lse - sel_x), 0.0)
    acc_den[...] += jnp.where(valid, sel_w, 0.0)

    @pl.when(j == pl.num_programs(2) - 1)
    def _():
        # Once-per-(split,batch) cross-lane reduce + sub-lane-width store:
        # off the hot path by design; do not move into the per-tile loop.
        num_ref[...] = jnp.sum(acc_num[...], keepdims=True)
        den_ref[...] = jnp.sum(acc_den[...], keepdims=True)


def _pick_tile(hw, cap):
    """Largest multiple of 128 <= cap dividing hw (avoids the tail mask), else
    the full extent (hw <= cap) or the largest multiple of 128 <= cap."""
    if hw <= cap:
        return hw
    cap128 = max(128, (cap // 128) * 128)
    for cand in range(cap128, 0, -128):
        if hw % cand == 0:
            return cand
    return cap128


def weighted_nll_loss(probs_5d, labels_5d, weights, *, probs_idx, label_idx,
                      pixel_tile=32768):
    """NLLLoss(weight, ignore_index=19, 'mean') on log_softmax(probs[:, probs_idx]).

    probs_5d  : [B, T,  C, H, W] float (f32 or bf16 — bf16 halves the HBM stream)
    labels_5d : [B, Tl, 1, H, W] int
    weights   : [C] float
    """
    B, T, C, H, W = probs_5d.shape
    Tl = labels_5d.shape[1]
    HW = H * W

    # Free minor-dim merges; no transpose, no pad, no frame slice-copy.
    logits = probs_5d.reshape(B, T, C, HW)
    labels = labels_5d.reshape(B, Tl, 1, HW).astype(jnp.int32)
    w_c1 = weights.astype(jnp.float32).reshape(C, 1)

    tile = _pick_tile(HW, pixel_tile)
    n_tiles = pl.cdiv(HW, tile)
    need_mask = (HW % tile) != 0

    # When B alone can't fill both v7x TensorCores (B odd, e.g. B == 1), split the
    # pixel-tile range across a leading "parallel" axis of size 2.  Neutral on
    # v5e/v6e (single TC).
    split = 2 if (B % 2 == 1 and n_tiles >= 2 and n_tiles % 2 == 0) else 1
    tiles_per_split = n_tiles // split

    kernel = functools.partial(_wnll_kernel, hw=HW, tile=tile,
                               need_mask=need_mask)

    # VMEM budget: double-buffered logits + labels blocks, plus headroom for the
    # compiler's [C, tile] f32 elementwise temporaries.  Raised above v5e's 16 MiB
    # scoped default when the tile is large; capped at 56 MiB so it stays inside
    # v7x's 64 MiB physical per TC (v5e/v6e have 128 MiB physical).
    c_pad = ((C + 7) // 8) * 8
    itemsize = jnp.dtype(logits.dtype).itemsize
    est = (2 * c_pad * tile * itemsize          # logits double-buffer
           + 2 * 8 * tile * 4                   # labels double-buffer (sublane-padded)
           + 8 * c_pad * tile * 4               # [C, tile] f32 temporaries headroom
           + 4 * tile * 4)                      # accumulators + misc
    vmem_limit = int(min(max(est, 32 * 1024 * 1024), 56 * 1024 * 1024))

    # TODO(synk): on v5e, if the trace shows exposed DMA waits at step boundaries,
    # try pipeline_mode=pl.Buffered(3) on the logits BlockSpec.

    num, den = pl.pallas_call(
        kernel,
        out_shape=(jax.ShapeDtypeStruct((split, B, 1, 1), jnp.float32),
                   jax.ShapeDtypeStruct((split, B, 1, 1), jnp.float32)),
        grid_spec=pltpu.PrefetchScalarGridSpec(
            num_scalar_prefetch=0,
            grid=(split, B, tiles_per_split),
            in_specs=[
                # Only frame `probs_idx` / `label_idx` is ever DMA'd.
                pl.BlockSpec((None, None, C, tile),
                             lambda h, b, j: (b, probs_idx, 0,
                                              h * tiles_per_split + j)),
                pl.BlockSpec((None, None, 1, tile),
                             lambda h, b, j: (b, label_idx, 0,
                                              h * tiles_per_split + j)),
                pl.BlockSpec((C, 1), lambda h, b, j: (0, 0)),
            ],
            out_specs=[
                pl.BlockSpec((None, None, 1, 1), lambda h, b, j: (h, b, 0, 0)),
                pl.BlockSpec((None, None, 1, 1), lambda h, b, j: (h, b, 0, 0)),
            ],
            scratch_shapes=[
                pltpu.VMEM((1, tile), jnp.float32),
                pltpu.VMEM((1, tile), jnp.float32),
            ],
        ),
        compiler_params=pltpu.CompilerParams(
            dimension_semantics=("parallel", "parallel", "arbitrary"),
            vmem_limit_bytes=vmem_limit),
    )(logits, labels, w_c1)

    # Weighted mean over the whole batch (matches PyTorch NLLLoss 'mean').
    # Note: if every pixel is ignore_index, den == 0 and this is NaN, matching
    # PyTorch behavior.
    return jnp.sum(num) / jnp.sum(den)


def cross_entropy_loss_2d(probs, labels, probs_aux, weights, *,
                          win_size, always_decode):
    """Forward of CrossEntropyLoss2d (Cityscapes branch).

    probs     : [B, T, C, H, W]  (T == win_size if always_decode else 1)
    labels    : [B, Tl, 1, H, W] int
    probs_aux : optional [B, T, C, H, W] (aux_mem_loss), or None
    """
    if always_decode:
        assert probs.shape[1] == win_size
    else:
        assert probs.shape[1] == 1

    last_frame_loss = True
    idx_start = win_size - 1
    loss_idx_step = 1 if probs_aux is None else 2

    losses = []
    for t in range(idx_start, win_size, loss_idx_step):
        label_idx = 0 if last_frame_loss else t
        probs_idx = 0 if not always_decode else t
        losses.append(
            weighted_nll_loss(probs, labels, weights,
                              probs_idx=probs_idx, label_idx=label_idx))
        if probs_aux is not None:
            losses.append(
                weighted_nll_loss(probs_aux, labels, weights,
                                  probs_idx=probs_idx, label_idx=label_idx))
    return sum(losses) / len(losses)


def _reference_loss(probs, labels, probs_aux, weights, *,
                    win_size, always_decode):
    """Pure-JAX reference matching F.log_softmax + nn.NLLLoss semantics."""
    last_frame_loss = True
    idx_start = win_size - 1
    loss_idx_step = 1 if probs_aux is None else 2

    def one(logits_bchw, lbl_bhw):
        logp = jax.nn.log_softmax(logits_bchw.astype(jnp.float32), axis=1)
        valid = lbl_bhw != IGNORE_INDEX
        lbl_safe = jnp.where(valid, lbl_bhw, 0)
        sel = jnp.take_along_axis(logp, lbl_safe[:, None], axis=1)[:, 0]
        w = weights[lbl_safe] * valid.astype(jnp.float32)
        return jnp.sum(-w * sel) / jnp.sum(w)

    losses = []
    for t in range(idx_start, win_size, loss_idx_step):
        label_idx = 0 if last_frame_loss else t
        probs_idx = 0 if not always_decode else t
        lbl = labels[:, label_idx, 0, :, :].astype(jnp.int32)
        losses.append(one(probs[:, probs_idx], lbl))
        if probs_aux is not None:
            losses.append(one(probs_aux[:, probs_idx], lbl))
    return sum(losses) / len(losses)


if __name__ == "__main__":
    # Small Cityscapes-like config: 20 classes (index 19 = ignore/void).
    B, WIN, C, H, Wd = 2, 3, 20, 16, 16
    always_decode = True

    key = jax.random.PRNGKey(0)
    k1, k2 = jax.random.split(key)

    probs = jax.random.normal(k1, (B, WIN, C, H, Wd), dtype=jnp.float32)
    labels = jax.random.randint(k2, (B, 1, 1, H, Wd), 0, C, dtype=jnp.int32)
    probs_aux = None  # model_struct != 'aux_mem_loss'

    # Deterministic synthetic class weights (classes_weights is dataset glue).
    weights = jnp.linspace(0.5, 1.5, C, dtype=jnp.float32)

    loss_fn = jax.jit(functools.partial(
        cross_entropy_loss_2d, win_size=WIN, always_decode=always_decode))

    # f32 path: exact match against the pure-JAX reference.
    loss = jax.block_until_ready(loss_fn(probs, labels, probs_aux, weights))
    ref = _reference_loss(probs, labels, probs_aux, weights,
                          win_size=WIN, always_decode=always_decode)
    assert jnp.allclose(loss, ref, rtol=1e-5, atol=1e-5), (loss, ref)

    # bf16 logits path (halves the dominant HBM stream; kernel upcasts per tile).
    probs_bf16 = probs.astype(jnp.bfloat16)
    loss_bf16 = jax.block_until_ready(
        loss_fn(probs_bf16, labels, probs_aux, weights))
    ref_bf16 = _reference_loss(probs_bf16, labels, probs_aux, weights,
                               win_size=WIN, always_decode=always_decode)
    assert jnp.allclose(loss_bf16, ref_bf16, rtol=1e-4, atol=1e-4), (
        loss_bf16, ref_bf16)

    print("KERNEL_OK")
</pallas_src>

<mosaic_0001>
module attributes {stable_mosaic.version = 11 : i64} {
  func.func @_wnll_kernel(%arg0: i32, %arg1: i32, %arg2: i32, %arg3: memref<1x1x20x256xf32, #tpu.memory_space<vmem>>, %arg4: memref<1x1x1x256xi32, #tpu.memory_space<vmem>>, %arg5: memref<20x1xf32, #tpu.memory_space<vmem>>, %arg6: memref<1x1x1x1xf32, #tpu.memory_space<vmem>>, %arg7: memref<1x1x1x1xf32, #tpu.memory_space<vmem>>, %arg8: memref<1x256xf32, #tpu.memory_space<vmem>>, %arg9: memref<1x256xf32, #tpu.memory_space<vmem>>) attributes {dimension_semantics = [#tpu.dimension_semantics<parallel>, #tpu.dimension_semantics<parallel>, #tpu.dimension_semantics<arbitrary>], iteration_bounds = array<i64: 1, 2, 1>, scalar_prefetch = 0 : i64, scratch_operands = 2 : i64, tpu.core_type = #tpu.core_type<tc>, window_params = [{transform_indices = @transform_0, window_bounds = array<i64: 1, 1, 20, 256>}, {transform_indices = @transform_1, window_bounds = array<i64: 1, 1, 1, 256>}, {pipeline_mode = #tpu.pipeline_mode<synchronous>, transform_indices = @transform_2, window_bounds = array<i64: 20, 1>}, {transform_indices = @transform_3, window_bounds = array<i64: 1, 1, 1, 1>}, {transform_indices = @transform_4, window_bounds = array<i64: 1, 1, 1, 1>}]} {
    %c0_i32 = arith.constant 0 : i32
    %0 = arith.cmpi eq, %arg2, %c0_i32 : i32
    %1 = arith.extui %0 : i1 to i32
    %c0_i32_0 = arith.constant 0 : i32
    %2 = arith.cmpi ne, %1, %c0_i32_0 : i32
    scf.if %2 {
      %cst_27 = arith.constant 0.000000e+00 : f32
      %47 = vector.broadcast %cst_27 : f32 to vector<1x256xf32>
      %c0_28 = arith.constant 0 : index
      %c0_29 = arith.constant 0 : index
      %48 = vector.load %arg8[%c0_28, %c0_29] : memref<1x256xf32, #tpu.memory_space<vmem>>, vector<1x256xf32>
      tpu.vector_store %arg8[%c0_28, %c0_29], %47 {strides = array<i32>} : memref<1x256xf32, #tpu.memory_space<vmem>>, vector<1x256xf32>,
      %cst_30 = arith.constant 0.000000e+00 : f32
      %49 = vector.broadcast %cst_30 : f32 to vector<1x256xf32>
      %c0_31 = arith.constant 0 : index
      %c0_32 = arith.constant 0 : index
      %50 = vector.load %arg9[%c0_31, %c0_32] : memref<1x256xf32, #tpu.memory_space<vmem>>, vector<1x256xf32>
      tpu.vector_store %arg9[%c0_31, %c0_32], %49 {strides = array<i32>} : memref<1x256xf32, #tpu.memory_space<vmem>>, vector<1x256xf32>,
    } else {
    }
    %c0 = arith.constant 0 : index
    %c0_1 = arith.constant 0 : index
    %c0_2 = arith.constant 0 : index
    %c0_3 = arith.constant 0 : index
    %3 = vector.load %arg3[%c0, %c0_1, %c0_2, %c0_3] : memref<1x1x20x256xf32, #tpu.memory_space<vmem>>, vector<1x1x20x256xf32>
    %4 = vector.shape_cast %3 : vector<1x1x20x256xf32> to vector<20x256xf32>
    %c0_4 = arith.constant 0 : index
    %c0_5 = arith.constant 0 : index
    %c0_6 = arith.constant 0 : index
    %c0_7 = arith.constant 0 : index
    %5 = vector.load %arg4[%c0_4, %c0_5, %c0_6, %c0_7] : memref<1x1x1x256xi32, #tpu.memory_space<vmem>>, vector<1x1x1x256xi32>
    %6 = vector.shape_cast %5 : vector<1x1x1x256xi32> to vector<1x256xi32>
    %cst = arith.constant dense<0xFF800000> : vector<256xf32>
    %7 = vector.multi_reduction <maximumf>, %4, %cst [0] : vector<20x256xf32> to vector<256xf32>
    %8 = vector.shape_cast %7 : vector<256xf32> to vector<1x256xf32>
    %9 = vector.broadcast %8 : vector<1x256xf32> to vector<20x256xf32>
    %10 = arith.subf %4, %9 : vector<20x256xf32>
    %11 = math.exp %10 : vector<20x256xf32>
    %cst_8 = arith.constant dense<0.000000e+00> : vector<256xf32>
    %12 = vector.multi_reduction <add>, %11, %cst_8 [0] : vector<20x256xf32> to vector<256xf32>
    %13 = vector.shape_cast %12 : vector<256xf32> to vector<1x256xf32>
    %14 = math.log %13 : vector<1x256xf32>
    %15 = arith.addf %8, %14 : vector<1x256xf32>
    %16 = tpu.iota {dimensions = array<i32: 0>} : vector<20x256xi32>
    %17 = vector.broadcast %6 : vector<1x256xi32> to vector<20x256xi32>
    %18 = arith.cmpi eq, %16, %17 : vector<20x256xi32>
    %c0_9 = arith.constant 0 : index
    %c0_10 = arith.constant 0 : index
    %19 = vector.load %arg5[%c0_9, %c0_10] : memref<20x1xf32, #tpu.memory_space<vmem>>, vector<20x1xf32>
    %cst_11 = arith.constant 0.000000e+00 : f32
    %20 = vector.shape_cast %19 : vector<20x1xf32> to vector<20x1xf32>
    %21 = vector.broadcast %20 : vector<20x1xf32> to vector<20x256xf32>
    %22 = vector.broadcast %cst_11 : f32 to vector<20x256xf32>
    %23 = arith.select %18, %21, %22 : vector<20x256xi1>, vector<20x256xf32>
    %cst_12 = arith.constant dense<0.000000e+00> : vector<256xf32>
    %24 = vector.multi_reduction <add>, %23, %cst_12 [0] : vector<20x256xf32> to vector<256xf32>
    %25 = vector.shape_cast %24 : vector<256xf32> to vector<1x256xf32>
    %cst_13 = arith.constant 0.000000e+00 : f32
    %26 = vector.broadcast %cst_13 : f32 to vector<20x256xf32>
    %27 = arith.select %18, %4, %26 : vector<20x256xi1>, vector<20x256xf32>
    %cst_14 = arith.constant dense<0.000000e+00> : vector<256xf32>
    %28 = vector.multi_reduction <add>, %27, %cst_14 [0] : vector<20x256xf32> to vector<256xf32>
    %29 = vector.shape_cast %28 : vector<256xf32> to vector<1x256xf32>
    %c19_i32 = arith.constant 19 : i32
    %30 = vector.broadcast %c19_i32 : i32 to vector<1x256xi32>
    %31 = arith.cmpi ne, %6, %30 : vector<1x256xi32>
    %c0_15 = arith.constant 0 : index
    %c0_16 = arith.constant 0 : index
    %32 = vector.load %arg8[%c0_15, %c0_16] : memref<1x256xf32, #tpu.memory_space<vmem>>, vector<1x256xf32>
    %33 = arith.subf %15, %29 : vector<1x256xf32>
    %34 = arith.mulf %25, %33 : vector<1x256xf32>
    %cst_17 = arith.constant 0.000000e+00 : f32
    %35 = vector.broadcast %cst_17 : f32 to vector<1x256xf32>
    %36 = arith.select %31, %34, %35 : vector<1x256xi1>, vector<1x256xf32>
    %37 = arith.addf %32, %36 : vector<1x256xf32>
    %c0_18 = arith.constant 0 : index
    %c0_19 = arith.constant 0 : index
    %38 = vector.load %arg8[%c0_18, %c0_19] : memref<1x256xf32, #tpu.memory_space<vmem>>, vector<1x256xf32>
    tpu.vector_store %arg8[%c0_18, %c0_19], %37 {strides = array<i32>} : memref<1x256xf32, #tpu.memory_space<vmem>>, vector<1x256xf32>,
    %c0_20 = arith.constant 0 : index
    %c0_21 = arith.constant 0 : index
    %39 = vector.load %arg9[%c0_20, %c0_21] : memref<1x256xf32, #tpu.memory_space<vmem>>, vector<1x256xf32>
    %cst_22 = arith.constant 0.000000e+00 : f32
    %40 = vector.broadcast %cst_22 : f32 to vector<1x256xf32>
    %41 = arith.select %31, %25, %40 : vector<1x256xi1>, vector<1x256xf32>
    %42 = arith.addf %39, %41 : vector<1x256xf32>
    %c0_23 = arith.constant 0 : index
    %c0_24 = arith.constant 0 : index
    %43 = vector.load %arg9[%c0_23, %c0_24] : memref<1x256xf32, #tpu.memory_space<vmem>>, vector<1x256xf32>
    tpu.vector_store %arg9[%c0_23, %c0_24], %42 {strides = array<i32>} : memref<1x256xf32, #tpu.memory_space<vmem>>, vector<1x256xf32>,
    %c0_i32_25 = arith.constant 0 : i32
    %44 = arith.cmpi eq, %arg2, %c0_i32_25 : i32
    %45 = arith.extui %44 : i1 to i32
    %c0_i32_26 = arith.constant 0 : i32
    %46 = arith.cmpi ne, %45, %c0_i32_26 : i32
    scf.if %46 {
      %c0_27 = arith.constant 0 : index
      %c0_28 = arith.constant 0 : index
      %47 = vector.load %arg8[%c0_27, %c0_28] : memref<1x256xf32, #tpu.memory_space<vmem>>, vector<1x256xf32>
      %48 = vector.shape_cast %47 : vector<1x256xf32> to vector<1x1x256xf32>
      %cst_29 = arith.constant dense<0.000000e+00> : vector<1xf32>
      %49 = vector.multi_reduction <add>, %48, %cst_29 [1, 2] : vector<1x1x256xf32> to vector<1xf32>
      %50 = vector.shape_cast %49 : vector<1xf32> to vector<1x1x1xf32>
      %51 = vector.extract %50[0, 0, 0] : f32 from vector<1x1x1xf32>
      %52 = vector.broadcast %51 : f32 to vector<1x1xf32>
      %c0_30 = arith.constant 0 : index
      %c0_31 = arith.constant 0 : index
      %c0_32 = arith.constant 0 : index
      %c0_33 = arith.constant 0 : index
      %53 = vector.load %arg6[%c0_30, %c0_31, %c0_32, %c0_33] : memref<1x1x1x1xf32, #tpu.memory_space<vmem>>, vector<1x1x1x1xf32>
      %54 = vector.shape_cast %53 : vector<1x1x1x1xf32> to vector<1x1xf32>
      %55 = vector.shape_cast %52 : vector<1x1xf32> to vector<1x1x1x1xf32>
      tpu.vector_store %arg6[%c0_30, %c0_31, %c0_32, %c0_33], %55 {strides = array<i32>} : memref<1x1x1x1xf32, #tpu.memory_space<vmem>>, vector<1x1x1x1xf32>,
      %c0_34 = arith.constant 0 : index
      %c0_35 = arith.constant 0 : index
      %56 = vector.load %arg9[%c0_34, %c0_35] : memref<1x256xf32, #tpu.memory_space<vmem>>, vector<1x256xf32>
      %57 = vector.shape_cast %56 : vector<1x256xf32> to vector<1x1x256xf32>
      %cst_36 = arith.constant dense<0.000000e+00> : vector<1xf32>
      %58 = vector.multi_reduction <add>, %57, %cst_36 [1, 2] : vector<1x1x256xf32> to vector<1xf32>
      %59 = vector.shape_cast %58 : vector<1xf32> to vector<1x1x1xf32>
      %60 = vector.extract %59[0, 0, 0] : f32 from vector<1x1x1xf32>
      %61 = vector.broadcast %60 : f32 to vector<1x1xf32>
      %c0_37 = arith.constant 0 : index
      %c0_38 = arith.constant 0 : index
      %c0_39 = arith.constant 0 : index
      %c0_40 = arith.constant 0 : index
      %62 = vector.load %arg7[%c0_37, %c0_38, %c0_39, %c0_40] : memref<1x1x1x1xf32, #tpu.memory_space<vmem>>, vector<1x1x1x1xf32>
      %63 = vector.shape_cast %62 : vector<1x1x1x1xf32> to vector<1x1xf32>
      %64 = vector.shape_cast %61 : vector<1x1xf32> to vector<1x1x1x1xf32>
      tpu.vector_store %arg7[%c0_37, %c0_38, %c0_39, %c0_40], %64 {strides = array<i32>} : memref<1x1x1x1xf32, #tpu.memory_space<vmem>>, vector<1x1x1x1xf32>,
    } else {
    }
    return
  }
  func.func @transform_0(%arg0: i32, %arg1: i32, %arg2: i32) -> (i32, i32, i32, i32) {
    %c1_i32 = arith.constant 1 : i32
    %0 = arith.muli %arg0, %c1_i32 : i32
    %1 = arith.addi %0, %arg2 : i32
    %c2_i32 = arith.constant 2 : i32
    %c0_i32 = arith.constant 0 : i32
    %c0_i32_0 = arith.constant 0 : i32
    return %arg1, %c2_i32, %c0_i32, %1 : i32, i32, i32, i32
  }
  func.func @transform_1(%arg0: i32, %arg1: i32, %arg2: i32) -> (i32, i32, i32, i32) {
    %c1_i32 = arith.constant 1 : i32
    %0 = arith.muli %arg0, %c1_i32 : i32
    %1 = arith.addi %0, %arg2 : i32
    %c0_i32 = arith.constant 0 : i32
    %c0_i32_0 = arith.constant 0 : i32
    %c0_i32_1 = arith.constant 0 : i32
    return %arg1, %c0_i32, %c0_i32_0, %1 : i32, i32, i32, i32
  }
  func.func @transform_2(%arg0: i32, %arg1: i32, %arg2: i32) -> (i32, i32) {
    %c0_i32 = arith.constant 0 : i32
    %c0_i32_0 = arith.constant 0 : i32
    %c0_i32_1 = arith.constant 0 : i32
    return %c0_i32, %c0_i32_0 : i32, i32
  }
  func.func @transform_3(%arg0: i32, %arg1: i32, %arg2: i32) -> (i32, i32, i32, i32) {
    %c0_i32 = arith.constant 0 : i32
    %c0_i32_0 = arith.constant 0 : i32
    %c0_i32_1 = arith.constant 0 : i32
    return %arg0, %arg1, %c0_i32, %c0_i32_0 : i32, i32, i32, i32
  }
  func.func @transform_4(%arg0: i32, %arg1: i32, %arg2: i32) -> (i32, i32, i32, i32) {
    %c0_i32 = arith.constant 0 : i32
    %c0_i32_0 = arith.constant 0 : i32
    %c0_i32_1 = arith.constant 0 : i32
    return %arg0, %arg1, %c0_i32, %c0_i32_0 : i32, i32, i32, i32
  }
}

</mosaic_0001>

<bundles_post_ra>
// kernel: cross_entropy_loss_2d.1
= control target key start
LH: loop header
LB: loop body
LE: loop exit
PB: predicated region body
PF: predicated region fallthrough
CT: control target
= control target key end

     0   :  { %s835_s15 = smov 0   ;;  %s837_s16 = smov 0   ;;  %s993_s0 = inlined_call_operand.vmem [shape: f32[2,3,20,256], index: 0, kind: input, shape index: {}]   ;;  %s994_s1 = inlined_call_operand.vmem [shape: s32[2,1,1,256], index: 1, kind: input, shape index: {}]   ;;  %s995_s2 = inlined_call_operand.vmem [shape: f32[20,1], index: 2, kind: input, shape index: {}]   ;;  %s996_s3 = inlined_call_operand.vmem [shape: f32[1,2,1,1], index: 3, kind: output, shape index: {0}]   ;;  %s997_s4 = inlined_call_operand.vmem [shape: f32[1,2,1,1], index: 4, kind: output, shape index: {1}]  }
   0x1   :  { %s839_s17 = smov 0  }
   0x2 LB: > { %s30_s18 = sadd.s32 1, %s801_s16  ;;  %p723_p0 = scmp.ge.s32.totalorder %s805_s17, 1  ;;  %s805_s17 = sphi %s839_s17, %s15_s17   ;;  %s801_s16 = sphi %s837_s16, %s1001_s16   ;;  %s797_s15 = sphi %s835_s15, %s1000_s15  }
   0x3   : > { %p32_p1 = scmp.ge.s32.totalorder %s30_s18, 2  ;;  %p220_p2 = scmp.lt.s32.totalorder %s805_s17, 3 }
   0x5   : > { %s1003_s18 = smov (%p32_p1, %s30_s18), 0  ;;  %p221_p3 = pnand %p723_p0, %p220_p2 }
   0x6   : > { %p272_p4 = scmp.lt.s32.totalorder (!%p221_p3), %s797_s15, 1 }
   0x7   : > { %224 = sbr.rel (%p221_p3) target bundleno = 386 (0x182), region = 32 }
   0xc   : > { %v404_v0 = vld [vmem:[%s995_s2] sm:$0xff]  ;;  %v406_v1 = vld [vmem:[%s995_s2 + $0x10] sm:$0xf]  ;;  %v807_v2 = vmov 0   ;;  %v312_v3 = vlaneseq  ;;  %v405_v4 = vld [vmem:[%s995_s2 + $0x8] sm:$0xff]  ;;  %v808_v6 = vmov 0.0  }
   0xd   : > { %765 = vset.pattern.permute.xlu0 %v807_v2  ;;  %766 = vset.pattern.permute.xlu1 %v807_v2  ;;  %s1005_s15 = smov (!%p272_p4, %s797_s15), 1  ;;  %vm325_vm1 = vcmask 1043456   ;;  %vm538_vm9 = vcmask 1040384   ;;  %vm552_vm10 = vcmask 0  }
   0xe   : > { %409 = vperm.xlu0 %765, %v404_v0   ;;  %419 = vperm.xlu1 %766, %v406_v1   ;;  %vm863_vm0 = vcmp.lt.s32.totalorder %v312_v3, 256  ;;  %s724_s25 = smul.u32 144, %s1005_s15  ;;  %s725_s29 = sshll.u32 %s1005_s15, 1  ;;  %v917_v55 = vshrl.u32 %v312_v3, 7 }
   0xf   : > { %316 = vst.msk [vmem:[#allocation2] sm:$0x3] %vm863_vm0, %v808_v6  ;;  %317 = vst.msk [vmem:[#allocation3] sm:$0x3] %vm863_vm0, %v808_v6  ;;  %s291_s6 = scalar_lea.vmem %s994_s1, %s725_s29  ;;  %s300_s9 = scalar_lea.vmem %s996_s3, %s1005_s15 }
  0x10   : > { %s650_s28 = scalar_lea.vmem %s993_s0, %s724_s25  ;;  %v923_v58 = vsub.s32 0, %v917_v55  ;;  %v925_v59 = vld [vmem:[%s291_s6] sm:$0x3]  ;;  %v928_v60 = vsub.s32 1, %v917_v55  ;;  %v388_v62 = vadd.s32 8, %v917_v55  ;;  %v389_v1 = vadd.s32 16, %v917_v55  ;;  %s307_s13 = scalar_lea.vmem %s997_s4, %s1005_s15 }
  0x11   : > { %v877_v7 = vld [vmem:[%s650_s28 + $0x80] sm:$0xf]  ;;  %v879_v8 = vld [vmem:[%s650_s28 + $0x88] sm:$0xf]  ;;  %v890_v14 = vld [vmem:[%s650_s28 + $0x70] sm:$0xff]  ;;  %vm470_vm8 = vcmp.ne.s32.totalorder %v925_v59, 19 }
  0x12   : > { %414 = vperm.xlu0 %765, %v405_v4   ;;  %v881_v9 = vld [vmem:[%s650_s28 + $0x60] sm:$0xff]  ;;  %v326_v10 = vsel %vm325_vm1, %v877_v7, -inf  ;;  %v885_v11 = vld [vmem:[%s650_s28 + $0x68] sm:$0xff]  ;;  %v335_v12 = vsel %vm325_vm1, %v879_v8, -inf  ;;  %v893_v16 = vld [vmem:[%s650_s28 + $0x78] sm:$0xff]  ;;  %v393_v0 = vrot.slane %v925_v59, %v923_v58  ;;  %v397_v2 = vrot.slane %v925_v59, %v928_v60 }
  0x13   : > { %v327_v13 = vmax.f32 %v881_v9, %v326_v10  ;;  %v336_v15 = vmax.f32 %v885_v11, %v335_v12 }
  0x14   : > { %vm400_vm2 = vcmp.eq.s32.totalorder %v388_v62, %v393_v0  ;;  %vm401_vm3 = vcmp.eq.s32.totalorder %v388_v62, %v397_v2  ;;  %vm398_vm4 = vcmp.eq.s32.totalorder %v917_v55, %v393_v0  ;;  %vm402_vm5 = vcmp.eq.s32.totalorder %v389_v1, %v393_v0 }
  0x15   : > { %v328_v17 = vmax.f32 %v327_v13, %v890_v14  ;;  %v337_v18 = vmax.f32 %v336_v15, %v893_v16  ;;  %vm403_vm6 = vcmp.eq.s32.totalorder %v389_v1, %v397_v2  ;;  %vm399_vm7 = vcmp.eq.s32.totalorder %v917_v55, %v397_v2 }
  0x16   : > { %v446_v6 = vsel %vm398_vm4, %v881_v9, 0.0  ;;  %v447_v10 = vsel %vm399_vm7, %v885_v11, 0.0  ;;  %v448_v12 = vsel %vm400_vm2, %v890_v14, 0.0  ;;  %v449_v13 = vsel %vm401_vm3, %v893_v16, 0.0 }
  0x17   : > { %v329_v19 = vrot.slane %v328_v17, 4  ;;  %v338_v20 = vrot.slane %v337_v18, 4 }
  0x19   : > { %v330_v21 = vmax.f32 %v328_v17, %v329_v19  ;;  %v339_v22 = vmax.f32 %v337_v18, %v338_v20  ;;  %v450_v18 = vsel %vm402_vm5, %v877_v7, 0.0  ;;  %v451_v19 = vsel %vm403_vm6, %v879_v8, 0.0 }
  0x1a   : > { %v452_v20 = vadd.f32 %v448_v12, %v446_v6 }
  0x1b   : > { %v331_v23 = vrot.slane %v330_v21, 2  ;;  %v340_v24 = vrot.slane %v339_v22, 2 }
  0x1d   : > { %v332_v25 = vmax.f32 %v330_v21, %v331_v23  ;;  %v341_v26 = vmax.f32 %v339_v22, %v340_v24  ;;  %v453_v22 = vsel %vm325_vm1, %v450_v18, 0.0 }
  0x1f   : > { %v333_v27 = vrot.slane %v332_v25, 1  ;;  %v342_v28 = vrot.slane %v341_v26, 1 }
  0x21   : > { %v897_v29 = vmax.f32 %v332_v25, %v333_v27  ;;  %v899_v30 = vmax.f32 %v341_v26, %v342_v28 }
  0x23   : > { %v344_v31 = vsub.f32 %v881_v9, %v897_v29  ;;  %v345_v32 = vsub.f32 %v885_v11, %v899_v30  ;;  %v346_v33 = vsub.f32 %v890_v14, %v897_v29  ;;  %v347_v34 = vsub.f32 %v893_v16, %v899_v30 }
  0x24   : > { %v348_v35 = vsub.f32 %v877_v7, %v897_v29  ;;  %v349_v37 = vsub.f32 %v879_v8, %v899_v30  ;;  %v461_v9 = vadd.f32 %v449_v13, %v447_v10  ;;  %v462_v11 = vsel %vm325_vm1, %v451_v19, 0.0 }
  0x25   : > { %v350_v36 = vmul.f32 1.442695, %v344_v31  ;;  %v352_v38 = vmul.f32 1.442695, %v345_v32  ;;  %v354_v39 = vmul.f32 1.442695, %v346_v33  ;;  %v454_v14 = vadd.f32 %v453_v22, %v452_v20 }
  0x26   : > { %v356_v40 = vmul.f32 1.442695, %v347_v34  ;;  %v358_v41 = vmul.f32 1.442695, %v348_v35  ;;  %v360_v42 = vmul.f32 1.442695, %v349_v37  ;;  %v463_v24 = vadd.f32 %v462_v11, %v461_v9 }
  0x27   : > { %767 = vpow2.f32 %v350_v36  ;;  %v455_v26 = vrot.slane %v454_v14, 4 }
  0x28   : > { %769 = vpow2.f32 %v352_v38  ;;  %v464_v27 = vrot.slane %v463_v24, 4 }
  0x29   : > { %771 = vpow2.f32 %v354_v39  ;;  %v456_v7 = vadd.f32 %v455_v26, %v454_v14  ;;  %v471_v26 = vld [vmem:[#allocation2] sm:$0x3] }
  0x2a   : > { %773 = vpow2.f32 %v356_v40  ;;  %v465_v28 = vadd.f32 %v464_v27, %v463_v24 }
  0x2b   : > { %775 = vpow2.f32 %v358_v41  ;;  %v457_v32 = vrot.slane %v456_v7, 2 }
  0x2c   : > { %777 = vpow2.f32 %v360_v42  ;;  %v466_v33 = vrot.slane %v465_v28, 2 }
  0x2d   : > { %v458_v39 = vadd.f32 %v457_v32, %v456_v7 }
  0x2e   : > { %v467_v40 = vadd.f32 %v466_v33, %v465_v28 }
  0x34   : > { %v768_v43 = vpop.eup %767 }
  0x35   : > { %v770_v44 = vpop.eup %769 }
  0x36   : > { %v772_v45 = vpop.eup %771 }
  0x37   : > { %v774_v46 = vpop.eup %773  ;;  %v362_v49 = vadd.f32 %v772_v45, %v768_v43 }
  0x38   : > { %v776_v47 = vpop.eup %775  ;;  %v371_v51 = vadd.f32 %v774_v46, %v770_v44 }
  0x39   : > { %v778_v48 = vpop.eup %777  ;;  %v363_v50 = vsel %vm325_vm1, %v776_v47, 0.0 }
  0x3a   : > { %v372_v52 = vsel %vm325_vm1, %v778_v48, 0.0  ;;  %v364_v53 = vadd.f32 %v363_v50, %v362_v49 }
  0x3b   : > { %v373_v54 = vadd.f32 %v372_v52, %v371_v51  ;;  %v459_v51 = vrot.slane %v458_v39, 1  ;;  %v468_v52 = vrot.slane %v467_v40, 1 }
  0x3c   : > { %v365_v56 = vrot.slane %v364_v53, 4 }
  0x3d   : > { %v374_v57 = vrot.slane %v373_v54, 4  ;;  %v460_v1 = vadd.f32 %v459_v51, %v458_v39  ;;  %v469_v2 = vadd.f32 %v468_v52, %v467_v40 }
  0x3e   : > { %v366_v61 = vadd.f32 %v365_v56, %v364_v53 }
  0x3f   : > { %v375_v63 = vadd.f32 %v374_v57, %v373_v54 }
  0x40   : > { %v367_v3 = vrot.slane %v366_v61, 2 }
  0x41   : > { %v376_v4 = vrot.slane %v375_v63, 2 }
  0x42   : > { %v368_v15 = vadd.f32 %v367_v3, %v366_v61  ;;  %v809_v61 = vmov 1966171168  }
  0x43   : > { %v377_v17 = vadd.f32 %v376_v4, %v375_v63  ;;  %v480_v63 = vunpack.c.l.s4 %v809_v61 }
  0x44   : > { %v369_v21 = vrot.slane %v368_v15, 1 }
  0x45   : > { %v378_v23 = vrot.slane %v377_v17, 1  ;;  %v481_v12 = vunpack.c.0.s8 %v480_v63 }
  0x46   : > { %v370_v25 = vadd.f32 %v369_v21, %v368_v15 }
  0x47   : > { %v379_v16 = vadd.f32 %v378_v23, %v377_v17  ;;  %v484_v22 = vsub.s32 %v481_v12, %v917_v55 }
  0x48   : > { %779 = vlog2.f32 %v370_v25  ;;  %v501_v25 = vld [vmem:[#allocation3] sm:$0x3] }
  0x49   : > { %781 = vlog2.f32 %v379_v16 }
  0x55   : > { %v780_v45 = vpop.eup %779 }
  0x56   : > { %v782_v48 = vpop.eup %781  ;;  %v381_v53 = vmul.f32 0.6931472, %v780_v45 }
  0x57   : > { %v383_v54 = vmul.f32 0.6931472, %v782_v48 }
  0x58   : > { %v384_v3 = vadd.f32 %v381_v53, %v897_v29 }
  0x59   : > { %v385_v4 = vadd.f32 %v383_v54, %v899_v30 }
  0x5a   : > { %v472_v19 = vsub.f32 %v384_v3, %v460_v1 }
  0x5b   : > { %v473_v20 = vsub.f32 %v385_v4, %v469_v2 }
  0x89   : > { %v410_v31 = vpop.permute.xlu0 %409  ;;  %v420_v8 = vpop.permute.xlu1 %419 }
  0x8a   : > { %v426_v34 = vsel %vm402_vm5, %v420_v8, 0.0  ;;  %v427_v35 = vsel %vm403_vm6, %v420_v8, 0.0  ;;  %v422_v36 = vsel %vm398_vm4, %v410_v31, 0.0  ;;  %v423_v37 = vsel %vm399_vm7, %v410_v31, 0.0 }
  0x8b   : > { %v429_v43 = vsel %vm325_vm1, %v426_v34, 0.0  ;;  %v438_v44 = vsel %vm325_vm1, %v427_v35, 0.0 }
  0x8d   : > { %v415_v38 = vpop.permute.xlu0 %414 }
  0x8e   : > { %v424_v41 = vsel %vm400_vm2, %v415_v38, 0.0  ;;  %v425_v42 = vsel %vm401_vm3, %v415_v38, 0.0 }
  0x8f   : > { %v428_v46 = vadd.f32 %v424_v41, %v422_v36  ;;  %v437_v47 = vadd.f32 %v425_v42, %v423_v37 }
  0x91   : > { %v430_v49 = vadd.f32 %v429_v43, %v428_v46  ;;  %v439_v50 = vadd.f32 %v438_v44, %v437_v47 }
  0x93   : > { %v431_v56 = vrot.slane %v430_v49, 4  ;;  %v440_v57 = vrot.slane %v439_v50, 4 }
  0x95   : > { %v432_v62 = vadd.f32 %v431_v56, %v430_v49  ;;  %v441_v0 = vadd.f32 %v440_v57, %v439_v50 }
  0x97   : > { %v433_v6 = vrot.slane %v432_v62, 2  ;;  %v442_v10 = vrot.slane %v441_v0, 2 }
  0x99   : > { %v434_v13 = vadd.f32 %v433_v6, %v432_v62  ;;  %v443_v15 = vadd.f32 %v442_v10, %v441_v0 }
  0x9b   : > { %v435_v17 = vrot.slane %v434_v13, 1  ;;  %v444_v18 = vrot.slane %v443_v15, 1 }
  0x9d   : > { %v436_v9 = vadd.f32 %v435_v17, %v434_v13  ;;  %v445_v21 = vadd.f32 %v444_v18, %v443_v15 }
  0x9f   : > { %v474_v11 = vmul.f32 %v472_v19, %v436_v9  ;;  %v475_v23 = vmul.f32 %v473_v20, %v445_v21  ;;  %v504_v14 = vcombine.low %v436_v9, %v445_v21 }
  0xa1   : > { %v478_v24 = vcombine.low %v474_v11, %v475_v23  ;;  %v511_v29 = vrot.slane %v504_v14, %v484_v22 }
  0xa3   : > { %v485_v30 = vrot.slane %v478_v24, %v484_v22  ;;  %v518_v16 = vrot.slane %v511_v29, %v484_v22 }
  0xa5   : > { %v492_v27 = vrot.slane %v485_v30, %v484_v22  ;;  %v520_v7 = vsel %vm470_vm8, %v518_v16, 0.0 }
  0xa6   : > { %v521_v28 = vadd.f32 %v520_v7, %v501_v25 }
  0xa7   : > { %v494_v31 = vsel %vm470_vm8, %v492_v27, 0.0 }
  0xa8   : > { %v495_v8 = vadd.f32 %v494_v31, %v471_v26  ;;  %522 = vst.msk [vmem:[#allocation3] sm:$0x3] %vm863_vm0, %v521_v28 }
  0xaa   : > { %500 = vst.msk [vmem:[#allocation2] sm:$0x3] %vm863_vm0, %v495_v8 }
  0xaf   : > { %v554_v55 = vld [vmem:[#allocation3] sm:$0x3] }
  0xb0   : > { %v559_v32 = vrot.slane %v554_v55, %v923_v58  ;;  %v563_v59 = vrot.slane %v554_v55, %v928_v60 }
  0xb1   : > { %v526_v33 = vld [vmem:[#allocation2] sm:$0x3] }
  0xb2   : > { %v566_v34 = vsel %vm538_vm9, %v559_v32, 0.0  ;;  %v567_v35 = vsel %vm538_vm9, %v563_v59, 0.0  ;;  %v531_v36 = vrot.slane %v526_v33, %v923_v58  ;;  %v535_v37 = vrot.slane %v526_v33, %v928_v60 }
  0xb3   : > { %v568_v38 = vadd.f32 %v567_v35, %v566_v34 }
  0xb4   : > { %v539_v39 = vsel %vm538_vm9, %v531_v36, 0.0  ;;  %v540_v40 = vsel %vm538_vm9, %v535_v37, 0.0 }
  0xb5   : > { %569 = vadd.xlane.f32.xlu0 %v568_v38  ;;  %v541_v41 = vadd.f32 %v540_v40, %v539_v39 }
  0xb7   : > { %542 = vadd.xlane.f32.xlu1 %v541_v41 }
 0x13e   : > { %v570_v5 = vpop.xlane.xlu0 %569 }
 0x13f   : > { %v571_v42 = vrot.slane %v570_v5, 4 }
 0x140   : > { %v543_v43 = vpop.xlane.xlu1 %542 }
 0x141   : > { %v572_v44 = vadd.f32 %v571_v42, %v570_v5  ;;  %v544_v45 = vrot.slane %v543_v43, 4 }
 0x143   : > { %v573_v46 = vrot.slane %v572_v44, 2  ;;  %v545_v47 = vadd.f32 %v544_v45, %v543_v43 }
 0x145   : > { %v574_v48 = vadd.f32 %v573_v46, %v572_v44  ;;  %v546_v49 = vrot.slane %v545_v47, 2 }
 0x147   : > { %v547_v58 = vadd.f32 %v546_v49, %v545_v47  ;;  %v575_v50 = vrot.slane %v574_v48, 1 }
 0x149   : > { %v548_v60 = vrot.slane %v547_v58, 1  ;;  %v576_v52 = vadd.f32 %v575_v50, %v574_v48 }
 0x14b   : > { %v549_v51 = vadd.f32 %v548_v60, %v547_v58 }
 0x14d   : > { %734 = vpush %v549_v51 }
 0x14e   : > { %736 = vpush %v576_v52 }
 0x17e   : > { %s735_s10 = spop %734 }
 0x17f   : > { %v551_v53 = vstv %s735_s10  ;;  %s737_s14 = spop %736 }
 0x180   : > { %553 = vst.msk [vmem:[%s300_s9] sm:$0x1] %vm552_vm10, %v551_v53  ;;  %v578_v54 = vstv %s737_s14 }
 0x181   : > { %579 = vst.msk [vmem:[%s307_s13] sm:$0x1] %vm552_vm10, %v578_v54 }
 0x182 PF: > { %s15_s17 = sadd.s32 1, %s805_s17   ;;  %s1000_s15 = smov %s801_s16 }
 0x183   : > { %p12_p5 = scmp.ge.s32.totalorder %s15_s17, 4   ;;  %s1001_s16 = smov %s1003_s18 }
 0x185   :  { %14 = sbr.rel (!%p12_p5) target bundleno = 2 (0x2), region = 85 }

</bundles_post_ra>
